<compile_context>
chip_gen: v6e
topology: v6e:2x2x1
jax: 0.10.0
libtpu: 0.0.40
codegen_flags: <defaults>
</compile_context>

<pallas_src>
import jax
import jax.numpy as jnp
from jax import lax
from jax.experimental import pallas as pl
from jax.experimental.pallas import tpu as pltpu

SMOOTH = 1.0
SMOOTH_IN_NOM = 1.0

_LANE = 128
_BUDGET_CAP = 20 << 20      # target total bytes for the double-buffered inputs


def _round_up(a, b):
    return (a + b - 1) // b * b


def _tpu_vmem_capacity():
    try:
        return int(pltpu.get_tpu_info().vmem_capacity_bytes)
    except Exception:
        return 64 << 20     # conservative fallback (v7x per-TensorCore VMEM)


def _has_two_tensorcores():
    try:
        kind = jax.devices()[0].device_kind.lower()
    except Exception:
        return False
    return any(tag in kind for tag in ("v4", "v5p", "v7"))


_VMEM_CAP = _tpu_vmem_capacity()
_TWO_CORES = _has_two_tensorcores()
_VMEM_LIMIT = int(min(_VMEM_CAP * 3 // 4, 64 << 20))


def _plan_tiles(C, hw, want_split):
    """Static (Python-int) tiling plan for the flattened spatial axis."""
    # Inner chunk width (lanes per fori_loop step) scales down with C so the
    # two (C, inner) f32 carries + unrolled temporaries stay within 64 vregs.
    if C >= 32:
        inner, unroll = 128, 2
    elif C >= 16:
        inner, unroll = 256, 4
    else:
        inner, unroll = 512, 8

    if hw < _LANE:
        # Tiny spatial extent: use full-dim blocks (allowed), single tile.
        return dict(inner=hw, tile=hw, unroll=1, n_total=1, n_split=1)

    lane_floor = (hw // _LANE) * _LANE          # >= 128 here
    inner = min(inner, lane_floor)

    # VMEM budget for the two double-buffered input blocks.  Per lane:
    #   x block: round_up(C, 8) f32 rows (sublane padding)
    #   label block (1, 1, tile): 8 sublanes of 4-byte words after padding
    budget = min(_VMEM_CAP // 3, _BUDGET_CAP)
    per_lane = 4 * (_round_up(C, 8) + 8)
    cap_lanes = max(inner, budget // (2 * per_lane))
    tile = max(inner, min(cap_lanes, lane_floor) // inner * inner)
    n_total = -(-hw // tile)

    # Rebalance so the tail tile isn't mostly empty (less wasted VPU work,
    # smaller VMEM footprint); keep every block start strictly in-bounds.
    t2 = max(inner, _round_up(-(-hw // n_total), inner))
    if t2 <= tile and (n_total - 1) * t2 < hw:
        tile = t2

    # Optional 2-way spatial split so both TensorCores get work (v4/v5p/v7x
    # with an odd batch).  Only if every block still starts in-bounds.
    n_split = 1
    if want_split and n_total >= 2:
        tot2 = _round_up(n_total, 2)
        t2 = max(inner, _round_up(-(-hw // tot2), inner))
        if t2 <= tile and (tot2 - 1) * t2 < hw:
            tile, n_total, n_split = t2, tot2, 2

    return dict(inner=inner, tile=tile, unroll=unroll,
                n_total=n_total, n_split=n_split)


def _make_kernel(*, hw, tile, inner, n_total, tiles_per_split, unroll):
    n_inner = tile // inner
    ragged = (hw % tile) != 0       # only the globally-last tile is partial
    unr = max(1, min(n_inner, unroll))

    def _off(j):
        off = j * inner
        if inner % _LANE == 0:
            off = pl.multiple_of(off, _LANE)
        return off

    def kernel(x_ref, y_ref, inter_ref, denom_ref):
        # x_ref:     (1, C, tile)       f32 network output tile
        # y_ref:     (1, 1, tile)       integer labels tile
        # inter_ref: (1, 1, C, inner)   resident per-lane partial sum of x*onehot(y)
        # denom_ref: (1, 1, C, inner)   resident per-lane partial sum of x+onehot(y)
        p = pl.program_id(0)
        s = pl.program_id(2)

        @pl.when(s == 0)
        def _():
            inter_ref[...] = jnp.zeros_like(inter_ref)
            denom_ref[...] = jnp.zeros_like(denom_ref)

        c_dim = x_ref.shape[1]
        # Hoisted: JAX does not CSE broadcasts/iotas inside the loop.
        ch_ids = lax.broadcasted_iota(jnp.int32, (c_dim, inner), 0)
        zeros = jnp.zeros((c_dim, inner), jnp.float32)

        def full_body(j, carry):
            ia, da = carry
            lo = _off(j)
            x_j = x_ref[0, :, pl.ds(lo, inner)]                     # (C, inner)
            y_j = y_ref[0, :, pl.ds(lo, inner)].astype(jnp.int32)   # (1, inner)
            hit = y_j == ch_ids                                     # (C, inner)
            ia = ia + jnp.where(hit, x_j, 0.0)
            da = da + (x_j + hit.astype(jnp.float32))
            return ia, da

        def accumulate(body):
            ia, da = lax.fori_loop(0, n_inner, body, (zeros, zeros), unroll=unr)
            inter_ref[0, 0] = inter_ref[0, 0] + ia
            denom_ref[0, 0] = denom_ref[0, 0] + da

        if not ragged:
            accumulate(full_body)
        else:
            t = p * tiles_per_split + s        # global spatial tile index
            lane_ids = lax.broadcasted_iota(jnp.int32, (1, inner), 1)

            def tail_body(j, carry):
                ia, da = carry
                lo = _off(j)
                # Lanes past the true spatial extent hold undefined data
                # (edge block) -> mask both x and the label compare.
                valid = lane_ids < (hw - t * tile - j * inner)       # (1, inner)
                x_j = x_ref[0, :, pl.ds(lo, inner)]
                y_j = y_ref[0, :, pl.ds(lo, inner)].astype(jnp.int32)
                hit = (y_j == ch_ids) & valid
                ia = ia + jnp.where(hit, x_j, 0.0)
                da = da + (jnp.where(valid, x_j, 0.0) + hit.astype(jnp.float32))
                return ia, da

            @pl.when(t < n_total - 1)
            def _():
                accumulate(full_body)

            @pl.when(t == n_total - 1)
            def _():
                accumulate(tail_body)

    return kernel


@jax.jit
def soft_dice_loss(x, y):
    """x: (B, C, H, W) float32 net output; y: (B, H, W) integer labels in [0, C)."""
    B, C, H, W = x.shape
    hw = H * W

    plan = _plan_tiles(C, hw, _TWO_CORES and (B % 2 == 1))
    inner, tile, unroll = plan["inner"], plan["tile"], plan["unroll"]
    n_total, n_split = plan["n_total"], plan["n_split"]
    tiles_per_split = n_total // n_split

    # Metadata-only reshapes (row-major contiguous) -> no HBM copies.
    x_flat = x.reshape(B, C, hw)
    y_flat = y.reshape(B, 1, hw)

    kernel = _make_kernel(hw=hw, tile=tile, inner=inner, n_total=n_total,
                          tiles_per_split=tiles_per_split, unroll=unroll)

    inter_p, denom_p = pl.pallas_call(
        kernel,
        out_shape=(
            jax.ShapeDtypeStruct((n_split, B, C, inner), jnp.float32),
            jax.ShapeDtypeStruct((n_split, B, C, inner), jnp.float32),
        ),
        grid_spec=pltpu.PrefetchScalarGridSpec(
            num_scalar_prefetch=0,
            grid=(n_split, B, tiles_per_split),
            in_specs=[
                pl.BlockSpec((1, C, tile),
                             lambda p, b, s: (b, 0, p * tiles_per_split + s)),
                pl.BlockSpec((1, 1, tile),
                             lambda p, b, s: (b, 0, p * tiles_per_split + s)),
            ],
            out_specs=[
                pl.BlockSpec((1, 1, C, inner), lambda p, b, s: (p, b, 0, 0)),
                pl.BlockSpec((1, 1, C, inner), lambda p, b, s: (p, b, 0, 0)),
            ],
        ),
        compiler_params=pltpu.CompilerParams(
            dimension_semantics=("parallel", "parallel", "arbitrary"),
            vmem_limit_bytes=_VMEM_LIMIT,
        ),
    )(x_flat, y_flat)

    # Tiny finishing math left to XLA (pairwise reductions -> more accurate).
    intersect = jnp.sum(inter_p, axis=(0, 3))     # (B, C)
    denom = jnp.sum(denom_p, axis=(0, 3))         # (B, C)
    dice = -((2.0 * intersect + SMOOTH_IN_NOM) / (denom + SMOOTH))
    return jnp.mean(dice)


def _soft_dice_reference(x, y):
    """Pure-JAX reference matching the PyTorch module's default forward path."""
    B, C, H, W = x.shape
    y_onehot = jax.nn.one_hot(y.astype(jnp.int32), C, axis=1, dtype=jnp.float32)
    intersect = jnp.sum(x * y_onehot, axis=(2, 3))
    denom = jnp.sum(x + y_onehot, axis=(2, 3))
    return jnp.mean(-((2.0 * intersect + SMOOTH_IN_NOM) / (denom + SMOOTH)))


if __name__ == "__main__":
    key = jax.random.PRNGKey(0)
    kx, ky = jax.random.split(key)

    # Primary case (lane-aligned spatial extent).
    B, C, H, W = 2, 4, 16, 16
    x = jax.nn.softmax(jax.random.normal(kx, (B, C, H, W), dtype=jnp.float32), axis=1)
    y = jax.random.randint(ky, (B, H, W), 0, C, dtype=jnp.int32)
    loss = jax.block_until_ready(soft_dice_loss(x, y))
    ref = _soft_dice_reference(x, y)
    assert jnp.allclose(loss, ref, rtol=1e-5, atol=1e-5), (loss, ref)

    # Ragged spatial extent (H*W not a multiple of 128) exercises the
    # in-kernel tail-masking path that replaced the wrapper-side jnp.pad.
    H2, W2 = 15, 15
    x2 = jax.nn.softmax(jax.random.normal(kx, (1, C, H2, W2), dtype=jnp.float32), axis=1)
    y2 = jax.random.randint(ky, (1, H2, W2), 0, C, dtype=jnp.int32)
    loss2 = jax.block_until_ready(soft_dice_loss(x2, y2))
    ref2 = _soft_dice_reference(x2, y2)
    assert jnp.allclose(loss2, ref2, rtol=1e-5, atol=1e-5), (loss2, ref2)

    print("KERNEL_OK")
</pallas_src>

<mosaic_0001>
module attributes {stable_mosaic.version = 11 : i64} {
  func.func @kernel(%arg0: i32, %arg1: i32, %arg2: i32, %arg3: memref<1x4x256xf32, #tpu.memory_space<vmem>>, %arg4: memref<1x1x256xi32, #tpu.memory_space<vmem>>, %arg5: memref<1x1x4x256xf32, #tpu.memory_space<vmem>>, %arg6: memref<1x1x4x256xf32, #tpu.memory_space<vmem>>) attributes {dimension_semantics = [#tpu.dimension_semantics<parallel>, #tpu.dimension_semantics<parallel>, #tpu.dimension_semantics<arbitrary>], iteration_bounds = array<i64: 1, 2, 1>, scalar_prefetch = 0 : i64, scratch_operands = 0 : i64, tpu.core_type = #tpu.core_type<tc>, window_params = [{transform_indices = @transform_0, window_bounds = array<i64: 1, 4, 256>}, {transform_indices = @transform_1, window_bounds = array<i64: 1, 1, 256>}, {transform_indices = @transform_2, window_bounds = array<i64: 1, 1, 4, 256>}, {transform_indices = @transform_3, window_bounds = array<i64: 1, 1, 4, 256>}]} {
    %c0_i32 = arith.constant 0 : i32
    %0 = arith.cmpi eq, %arg2, %c0_i32 : i32
    %1 = arith.extui %0 : i1 to i32
    %c0_i32_0 = arith.constant 0 : i32
    %2 = arith.cmpi ne, %1, %c0_i32_0 : i32
    scf.if %2 {
      %cst_22 = arith.constant 0.000000e+00 : f32
      %34 = vector.broadcast %cst_22 : f32 to vector<1x1x4x256xf32>
      %c0_23 = arith.constant 0 : index
      %c0_24 = arith.constant 0 : index
      %c0_25 = arith.constant 0 : index
      %c0_26 = arith.constant 0 : index
      %35 = vector.load %arg5[%c0_23, %c0_24, %c0_25, %c0_26] : memref<1x1x4x256xf32, #tpu.memory_space<vmem>>, vector<1x1x4x256xf32>
      tpu.vector_store %arg5[%c0_23, %c0_24, %c0_25, %c0_26], %34 {strides = array<i32>} : memref<1x1x4x256xf32, #tpu.memory_space<vmem>>, vector<1x1x4x256xf32>,
      %cst_27 = arith.constant 0.000000e+00 : f32
      %36 = vector.broadcast %cst_27 : f32 to vector<1x1x4x256xf32>
      %c0_28 = arith.constant 0 : index
      %c0_29 = arith.constant 0 : index
      %c0_30 = arith.constant 0 : index
      %c0_31 = arith.constant 0 : index
      %37 = vector.load %arg6[%c0_28, %c0_29, %c0_30, %c0_31] : memref<1x1x4x256xf32, #tpu.memory_space<vmem>>, vector<1x1x4x256xf32>
      tpu.vector_store %arg6[%c0_28, %c0_29, %c0_30, %c0_31], %36 {strides = array<i32>} : memref<1x1x4x256xf32, #tpu.memory_space<vmem>>, vector<1x1x4x256xf32>,
    } else {
    }
    %3 = tpu.iota {dimensions = array<i32: 0>} : vector<4x256xi32>
    %cst = arith.constant 0.000000e+00 : f32
    %4 = vector.broadcast %cst : f32 to vector<4x256xf32>
    %c0_i32_1 = arith.constant 0 : i32
    %c256_i32 = arith.constant 256 : i32
    %5 = arith.muli %c0_i32_1, %c256_i32 : i32
    %6 = tpu.assume_multiple %5, 128 : i32
    %c0 = arith.constant 0 : index
    %c0_2 = arith.constant 0 : index
    %7 = arith.index_cast %6 : i32 to index
    %8 = vector.load %arg3[%c0, %c0_2, %7] : memref<1x4x256xf32, #tpu.memory_space<vmem>>, vector<1x4x256xf32>
    %9 = vector.shape_cast %8 : vector<1x4x256xf32> to vector<4x256xf32>
    %c0_3 = arith.constant 0 : index
    %c0_4 = arith.constant 0 : index
    %10 = arith.index_cast %6 : i32 to index
    %11 = vector.load %arg4[%c0_3, %c0_4, %10] : memref<1x1x256xi32, #tpu.memory_space<vmem>>, vector<1x1x256xi32>
    %12 = vector.shape_cast %11 : vector<1x1x256xi32> to vector<1x256xi32>
    %13 = vector.broadcast %12 : vector<1x256xi32> to vector<4x256xi32>
    %14 = arith.cmpi eq, %13, %3 : vector<4x256xi32>
    %cst_5 = arith.constant 0.000000e+00 : f32
    %15 = vector.broadcast %cst_5 : f32 to vector<4x256xf32>
    %16 = arith.select %14, %9, %15 : vector<4x256xi1>, vector<4x256xf32>
    %17 = arith.addf %4, %16 : vector<4x256xf32>
    %18 = arith.extui %14 : vector<4x256xi1> to vector<4x256xi32>
    %19 = arith.sitofp %18 : vector<4x256xi32> to vector<4x256xf32>
    %20 = arith.addf %9, %19 : vector<4x256xf32>
    %21 = arith.addf %4, %20 : vector<4x256xf32>
    %c1_i32 = arith.constant 1 : i32
    %c0_6 = arith.constant 0 : index
    %c0_7 = arith.constant 0 : index
    %c0_8 = arith.constant 0 : index
    %c0_9 = arith.constant 0 : index
    %22 = vector.load %arg5[%c0_6, %c0_7, %c0_8, %c0_9] : memref<1x1x4x256xf32, #tpu.memory_space<vmem>>, vector<1x1x4x256xf32>
    %23 = vector.shape_cast %22 : vector<1x1x4x256xf32> to vector<4x256xf32>
    %24 = arith.addf %23, %17 : vector<4x256xf32>
    %c0_10 = arith.constant 0 : index
    %c0_11 = arith.constant 0 : index
    %c0_12 = arith.constant 0 : index
    %c0_13 = arith.constant 0 : index
    %25 = vector.load %arg5[%c0_10, %c0_11, %c0_12, %c0_13] : memref<1x1x4x256xf32, #tpu.memory_space<vmem>>, vector<1x1x4x256xf32>
    %26 = vector.shape_cast %25 : vector<1x1x4x256xf32> to vector<4x256xf32>
    %27 = vector.shape_cast %24 : vector<4x256xf32> to vector<1x1x4x256xf32>
    tpu.vector_store %arg5[%c0_10, %c0_11, %c0_12, %c0_13], %27 {strides = array<i32>} : memref<1x1x4x256xf32, #tpu.memory_space<vmem>>, vector<1x1x4x256xf32>,
    %c0_14 = arith.constant 0 : index
    %c0_15 = arith.constant 0 : index
    %c0_16 = arith.constant 0 : index
    %c0_17 = arith.constant 0 : index
    %28 = vector.load %arg6[%c0_14, %c0_15, %c0_16, %c0_17] : memref<1x1x4x256xf32, #tpu.memory_space<vmem>>, vector<1x1x4x256xf32>
    %29 = vector.shape_cast %28 : vector<1x1x4x256xf32> to vector<4x256xf32>
    %30 = arith.addf %29, %21 : vector<4x256xf32>
    %c0_18 = arith.constant 0 : index
    %c0_19 = arith.constant 0 : index
    %c0_20 = arith.constant 0 : index
    %c0_21 = arith.constant 0 : index
    %31 = vector.load %arg6[%c0_18, %c0_19, %c0_20, %c0_21] : memref<1x1x4x256xf32, #tpu.memory_space<vmem>>, vector<1x1x4x256xf32>
    %32 = vector.shape_cast %31 : vector<1x1x4x256xf32> to vector<4x256xf32>
    %33 = vector.shape_cast %30 : vector<4x256xf32> to vector<1x1x4x256xf32>
    tpu.vector_store %arg6[%c0_18, %c0_19, %c0_20, %c0_21], %33 {strides = array<i32>} : memref<1x1x4x256xf32, #tpu.memory_space<vmem>>, vector<1x1x4x256xf32>,
    return
  }
  func.func @transform_0(%arg0: i32, %arg1: i32, %arg2: i32) -> (i32, i32, i32) {
    %c1_i32 = arith.constant 1 : i32
    %0 = arith.muli %arg0, %c1_i32 : i32
    %1 = arith.addi %0, %arg2 : i32
    %c0_i32 = arith.constant 0 : i32
    %c0_i32_0 = arith.constant 0 : i32
    return %arg1, %c0_i32, %1 : i32, i32, i32
  }
  func.func @transform_1(%arg0: i32, %arg1: i32, %arg2: i32) -> (i32, i32, i32) {
    %c1_i32 = arith.constant 1 : i32
    %0 = arith.muli %arg0, %c1_i32 : i32
    %1 = arith.addi %0, %arg2 : i32
    %c0_i32 = arith.constant 0 : i32
    %c0_i32_0 = arith.constant 0 : i32
    return %arg1, %c0_i32, %1 : i32, i32, i32
  }
  func.func @transform_2(%arg0: i32, %arg1: i32, %arg2: i32) -> (i32, i32, i32, i32) {
    %c0_i32 = arith.constant 0 : i32
    %c0_i32_0 = arith.constant 0 : i32
    %c0_i32_1 = arith.constant 0 : i32
    return %arg0, %arg1, %c0_i32, %c0_i32_0 : i32, i32, i32, i32
  }
  func.func @transform_3(%arg0: i32, %arg1: i32, %arg2: i32) -> (i32, i32, i32, i32) {
    %c0_i32 = arith.constant 0 : i32
    %c0_i32_0 = arith.constant 0 : i32
    %c0_i32_1 = arith.constant 0 : i32
    return %arg0, %arg1, %c0_i32, %c0_i32_0 : i32, i32, i32, i32
  }
}

</mosaic_0001>

<bundles_post_ra>
// kernel: soft_dice_loss.1
= control target key start
LH: loop header
LB: loop body
LE: loop exit
PB: predicated region body
PF: predicated region fallthrough
CT: control target
= control target key end

     0   :  { %s583_s12 = smov 0   ;;  %s585_s13 = smov 0   ;;  %s622_s0 = inlined_call_operand.vmem [shape: f32[2,4,256], index: 0, kind: input, shape index: {}]   ;;  %s623_s1 = inlined_call_operand.vmem [shape: s32[2,1,256], index: 1, kind: input, shape index: {}]   ;;  %s624_s2 = inlined_call_operand.vmem [shape: f32[1,2,4,256], index: 2, kind: output, shape index: {0}]   ;;  %s625_s3 = inlined_call_operand.vmem [shape: f32[1,2,4,256], index: 3, kind: output, shape index: {1}]  }
   0x1   :  { %s587_s14 = smov 0  }
   0x2 LB: > { %s29_s15 = sadd.s32 1, %s556_s13  ;;  %p497_p0 = scmp.ge.s32.totalorder %s560_s14, 1  ;;  %s560_s14 = sphi %s587_s14, %s14_s14   ;;  %s556_s13 = sphi %s585_s13, %s627_s13   ;;  %s552_s12 = sphi %s583_s12, %s626_s12  }
   0x3   : > { %p31_p1 = scmp.ge.s32.totalorder %s29_s15, 2  ;;  %p194_p2 = scmp.lt.s32.totalorder %s560_s14, 3 }
   0x5   : > { %s629_s15 = smov (%p31_p1, %s29_s15), 0  ;;  %p195_p3 = pnand %p497_p0, %p194_p2 }
   0x6   : > { %p247_p4 = scmp.lt.s32.totalorder (!%p195_p3), %s552_s12, 1 }
   0x7   : > { %198 = sbr.rel (%p195_p3) target bundleno = 27 (0x1b), region = 28 }
   0xc   : > { %v292_v0 = vlaneseq  ;;  %s631_s12 = smov (!%p247_p4, %s552_s12), 1  ;;  %v562_v9 = vmov 0.0  }
   0xd   : > { %s509_s16 = sshll.u32 %s631_s12, 3  ;;  %s500_s17 = sshll.u32 %s631_s12, 1 }
   0xe   : > { %v293_v1 = vshrl.u32 %v292_v0, 7  ;;  %s254_s20 = scalar_lea.vmem %s622_s0, %s509_s16  ;;  %s265_s23 = scalar_lea.vmem %s623_s1, %s500_s17 }
   0xf   : > { %v294_v4 = vld [vmem:[%s254_s20] sm:$0xff]  ;;  %s276_s26 = scalar_lea.vmem %s624_s2, %s509_s16  ;;  %s285_s29 = scalar_lea.vmem %s625_s3, %s509_s16 }
  0x10   : > { %v298_v2 = vsub.s32 0, %v293_v1  ;;  %v302_v3 = vsub.s32 1, %v293_v1  ;;  %v295_v5 = vld [vmem:[%s265_s23] sm:$0x3]  ;;  %v307_v8 = vcombine.high %v294_v4, %v294_v4 }
  0x12   : > { %v299_v6 = vrot.slane %v295_v5, %v298_v2  ;;  %v303_v7 = vrot.slane %v295_v5, %v302_v3 }
  0x14   : > { %vm304_vm0 = vcmp.eq.s32.totalorder %v299_v6, %v293_v1  ;;  %vm305_vm1 = vcmp.eq.s32.totalorder %v303_v7, %v293_v1 }
  0x15   : > { %v505_v10 = vsel %vm304_vm0, 1.0, %v562_v9  ;;  %v506_v11 = vsel %vm305_vm1, 1.0, %v562_v9  ;;  %v309_v12 = vsel %vm304_vm0, %v294_v4, 0.0  ;;  %v310_v13 = vsel %vm305_vm1, %v307_v8, 0.0 }
  0x16   : > { %v326_v14 = vcombine.low %v309_v12, %v310_v13  ;;  %v319_v15 = vcombine.low %v505_v10, %v506_v11 }
  0x18   : > { %v321_v16 = vadd.f32 %v319_v15, %v294_v4  ;;  %329 = vst [vmem:[%s276_s26] sm:$0xff] %v326_v14 }
  0x1a   : > { %332 = vst [vmem:[%s285_s29] sm:$0xff] %v321_v16 }
  0x1b PF: > { %s14_s14 = sadd.s32 1, %s560_s14   ;;  %s626_s12 = smov %s556_s13 }
  0x1c   : > { %p11_p5 = scmp.ge.s32.totalorder %s14_s14, 4   ;;  %s627_s13 = smov %s629_s15 }
  0x1e   :  { %13 = sbr.rel (!%p11_p5) target bundleno = 2 (0x2), region = 77 }

</bundles_post_ra>
